<compile_context>
chip_gen: v5e
topology: v5e:2x2
jax: 0.10.0
libtpu: 0.0.40
codegen_flags: <defaults>
</compile_context>

<pallas_src>
import jax
import jax.numpy as jnp
from jax.experimental import pallas as pl
from jax.experimental.pallas import tpu as pltpu

_LANES = 512                      # preferred lane-dense width (large multiple of 128)
_TARGET_TILE_BYTES = 8 << 20      # ~8 MiB per buffer: amortizes ~0.35 us/step overhead
_MIN_SPLIT_BYTES = 1 << 20        # ~1 MiB floor per tile when splitting for 2 TCs (v7x)
_MIN_PALLAS_ELEMENTS = 1 << 20    # below this, launch overhead + lost fusion dominate


def _temp_scale_kernel(temp_ref, x_ref, o_ref):
    # temp_ref: (1, 1) float32 scalar in SMEM; x_ref / o_ref: (tb, lanes) VMEM tiles.
    inv_t = 1.0 / temp_ref[0, 0]                       # exact f32 scalar reciprocal
    o_ref[...] = (x_ref[...].astype(jnp.float32) * inv_t).astype(o_ref.dtype)


def _xla_fallback(logits, temp_f32):
    return (logits.astype(jnp.float32) / temp_f32).astype(logits.dtype)


def temperature_scaling(logits: jax.Array, temperature, *, use_pallas=None) -> jax.Array:
    """TemperatureScaling.forward: elementwise logits / temperature."""
    temp_f32 = jnp.asarray(temperature, dtype=jnp.float32)
    n = logits.size

    if use_pallas is None:
        # A standalone elementwise kernel costs an extra HBM round trip vs. letting
        # XLA fuse the divide into the logits producer; only worth it when large.
        use_pallas = n >= _MIN_PALLAS_ELEMENTS
    if not use_pallas or n == 0:
        return _xla_fallback(logits, temp_f32)

    itemsize = jnp.dtype(logits.dtype).itemsize

    # Pick a 2-D view using only zero-copy reshapes (no pad / slice HBM traffic).
    if n % _LANES == 0:
        lanes = _LANES                                 # flat lane-dense (rows, 512) view
    elif logits.ndim >= 2:
        lanes = logits.shape[-1]                       # merge leading dims; keep last dim
    else:
        lanes = n                                      # ragged 1-D: single row
    rows = n // lanes

    if lanes * itemsize > _TARGET_TILE_BYTES:
        # A single (ragged) row would blow the per-buffer VMEM budget; let XLA do it.
        return _xla_fallback(logits, temp_f32)

    x2d = logits.reshape(rows, lanes)
    row_bytes = lanes * itemsize

    # Tile rows by bytes: ~8 MiB/buffer (2 in-bufs + 2 out-bufs ~ 32 MiB total).
    tb = max(1, _TARGET_TILE_BYTES // row_bytes)
    if tb >= rows:
        tb = rows
        # v7x has 2 TensorCores sharing a "parallel" grid axis: when the work fits in
        # one tile but is big enough to split (>= 2 x ~1 MiB), halve the tile so both
        # cores get a step instead of one core doing everything.
        if rows > 8 and rows * row_bytes >= 2 * _MIN_SPLIT_BYTES:
            half = (((rows + 1) // 2 + 7) // 8) * 8    # multiple of 8 (sublane tiling)
            if half < rows:
                tb = half
    else:
        tb = max(8, (tb // 8) * 8)                     # multiple of 8 (sublane tiling)

    grid = (pl.cdiv(rows, tb),)
    temp_2d = temp_f32.reshape(1, 1)                   # float32 SMEM scalar always

    out2d = pl.pallas_call(
        _temp_scale_kernel,
        out_shape=jax.ShapeDtypeStruct((rows, lanes), logits.dtype),
        grid=grid,
        in_specs=[
            pl.BlockSpec((1, 1), lambda i: (0, 0), memory_space=pltpu.SMEM),
            pl.BlockSpec((tb, lanes), lambda i: (i, 0)),
        ],
        out_specs=pl.BlockSpec((tb, lanes), lambda i: (i, 0)),
        compiler_params=pltpu.CompilerParams(
            # Independent row tiles -> shard grid steps across TensorCores on v7x.
            dimension_semantics=("parallel",),
            # ~32 MiB of double-buffered tiles + headroom; safe on v5e/v6e/v7x.
            vmem_limit_bytes=48 << 20,
        ),
        cost_estimate=pl.CostEstimate(
            flops=n,
            transcendentals=0,
            bytes_accessed=2 * n * itemsize,
        ),
    )(temp_2d, x2d)

    return out2d.reshape(logits.shape)


if __name__ == "__main__":
    # Deterministic parameter init, matching nn.Parameter(torch.tensor(1.5)).
    temperature = jnp.float32(1.5)
    key = jax.random.PRNGKey(0)

    # Small example logits: batch=8, num_classes=32 (ragged last dim -> full-extent path).
    logits = jax.random.normal(key, (8, 32), dtype=jnp.float32)
    out = temperature_scaling(logits, temperature, use_pallas=True)
    jax.block_until_ready(out)
    ref = logits / temperature
    assert jnp.allclose(out, ref, atol=1e-6, rtol=1e-6), "mismatch vs reference (ragged path)"

    # Also exercise the lane-dense flat (rows, 512) path: 4 * 512 elements.
    logits2 = jax.random.normal(jax.random.PRNGKey(1), (4, 512), dtype=jnp.float32)
    out2 = temperature_scaling(logits2, temperature, use_pallas=True)
    jax.block_until_ready(out2)
    ref2 = logits2 / temperature
    assert jnp.allclose(out2, ref2, atol=1e-6, rtol=1e-6), "mismatch vs reference (flat path)"

    print("KERNEL_OK")
</pallas_src>

<mosaic_0001>
module attributes {stable_mosaic.version = 11 : i64} {
  func.func @_temp_scale_kernel(%arg0: i32, %arg1: memref<1x1xf32, #tpu.memory_space<smem>>, %arg2: memref<8x32xf32, #tpu.memory_space<vmem>>, %arg3: memref<8x32xf32, #tpu.memory_space<vmem>>) attributes {dimension_semantics = [#tpu.dimension_semantics<parallel>], iteration_bounds = array<i64: 1>, scalar_prefetch = 0 : i64, scratch_operands = 0 : i64, tpu.core_type = #tpu.core_type<tc>, window_params = [{transform_indices = @transform_0, window_bounds = array<i64: 1, 1>}, {transform_indices = @transform_1, window_bounds = array<i64: 8, 32>}, {transform_indices = @transform_2, window_bounds = array<i64: 8, 32>}]} {
    %c0 = arith.constant 0 : index
    %c0_0 = arith.constant 0 : index
    %0 = memref.load %arg1[%c0, %c0_0] : memref<1x1xf32, #tpu.memory_space<smem>>
    %cst = arith.constant 1.000000e+00 : f32
    %1 = arith.divf %cst, %0 : f32
    %c0_1 = arith.constant 0 : index
    %c0_2 = arith.constant 0 : index
    %2 = vector.load %arg2[%c0_1, %c0_2] : memref<8x32xf32, #tpu.memory_space<vmem>>, vector<8x32xf32>
    %3 = vector.broadcast %1 : f32 to vector<8x32xf32>
    %4 = arith.mulf %2, %3 : vector<8x32xf32>
    %c0_3 = arith.constant 0 : index
    %c0_4 = arith.constant 0 : index
    %5 = vector.load %arg3[%c0_3, %c0_4] : memref<8x32xf32, #tpu.memory_space<vmem>>, vector<8x32xf32>
    tpu.vector_store %arg3[%c0_3, %c0_4], %4 {strides = array<i32>} : memref<8x32xf32, #tpu.memory_space<vmem>>, vector<8x32xf32>,
    return
  }
  func.func @transform_0(%arg0: i32) -> (i32, i32) {
    %c0_i32 = arith.constant 0 : i32
    %c0_i32_0 = arith.constant 0 : i32
    %c0_i32_1 = arith.constant 0 : i32
    return %c0_i32, %c0_i32_0 : i32, i32
  }
  func.func @transform_1(%arg0: i32) -> (i32, i32) {
    %c0_i32 = arith.constant 0 : i32
    %c0_i32_0 = arith.constant 0 : i32
    return %arg0, %c0_i32 : i32, i32
  }
  func.func @transform_2(%arg0: i32) -> (i32, i32) {
    %c0_i32 = arith.constant 0 : i32
    %c0_i32_0 = arith.constant 0 : i32
    return %arg0, %c0_i32 : i32, i32
  }
}

</mosaic_0001>

<bundles_post_ra>
// kernel: tpu_custom_call.1
= control target key start
LH: loop header
LB: loop body
LE: loop exit
PB: predicated region body
PF: predicated region fallthrough
CT: control target
= control target key end

     0   :  { %8 = vsyncpa [#allocation4], 0  ;;  %s150_s0 = inlined_call_operand.<no memory space> [shape: f32[1,1], index: 0, kind: input, shape index: {}]   ;;  %s151_s1 = inlined_call_operand.hbm [shape: f32[8,32], index: 1, kind: input, shape index: {}]   ;;  %s152_s2 = inlined_call_operand.hbm [shape: f32[8,32], index: 2, kind: output, shape index: {}]  }
   0x1   :  { %9 = vsyncpa [#allocation5], 0  ;;  %s17_s11 = sshll.u32 %s151_s1, 4  ;;  %s124_s12 = smov [#allocation3]   ;;  %v28_v0 = vstv %s150_s0  ;;  %s18_s11 = int_to_ptr.hbm [resolvable:$true] %s17_s11 }
   0x2   :  { %s19_s13 = sshll.u32 %s124_s12, 4  ;;  %s20_s13 = int_to_ptr.vmem [resolvable:$true] %s19_s13 }
   0x3   :  { %22 = dma.hbm_to_vmem [thread:$0]  %s18_s11, 128, %s20_s13, [#allocation4]  }
   0x4   :  { %120 = dma.done.wait [#allocation4], 128  }
   0x5   :  { %121 = vsyncadd [#allocation4], 4294967168  ;;  %70 = vrcp.f32 %v28_v0  ;;  %v40_v3 = vand.u32 2147483648, %v28_v0  ;;  %vm34_vm0 = vweird.f32 %v28_v0  ;;  %v38_v5 = vand.u32 2147483647, %v28_v0  ;;  %v44_v11 = vld [vmem:[#allocation3] sm:$0xff] }
   0x6   :  { %s125_s0 = smov [#allocation6]   ;;  %s56_s18 = sshll.u32 %s152_s2, 4  ;;  %vm47_vm4 = vcmask 261120   ;;  %s57_s18 = int_to_ptr.hbm [resolvable:$true] %s56_s18 }
   0x7   :  { %v41_v7 = vor.u32 1.1754944e-38, %v40_v3  ;;  %vm39_vm3 = vcmp.eq.f32.partialorder %v38_v5, 8.507059e+37  ;;  %s54_s1 = sshll.u32 %s125_s0, 4  ;;  %s55_s1 = int_to_ptr.vmem [resolvable:$true] %s54_s1 }
   0xb   :  { %v71_v1 = vpop.eup %70 }
   0xc   :  { %v30_v2 = vmul.f32 %v71_v1, %v28_v0  ;;  %vm35_vm1 = vweird.f32 %v71_v1 }
   0xd   :  { %vm36_vm2 = vmor %vm34_vm0, %vm35_vm1 }
   0xe   :  { %v31_v4 = vsub.f32 1.0, %v30_v2 }
  0x10   :  { %v32_v6 = vmul.f32 %v71_v1, %v31_v4 }
  0x12   :  { %v33_v8 = vadd.f32 %v71_v1, %v32_v6 }
  0x14   :  { %v37_v9 = vsel %vm36_vm2, %v71_v1, %v33_v8 }
  0x15   :  { %v42_v10 = vsel %vm39_vm3, %v41_v7, %v37_v9 }
  0x16   :  { %66 = vpush %v42_v10 }
  0x47   :  { %s67_s19 = spop %66 }
  0x48   :  { %v45_v12 = vstv %s67_s19 }
  0x49   :  { %v46_v13 = vmul.f32 %v45_v12, %v44_v11 }
  0x4b   :  { %48 = vst.msk [vmem:[#allocation6] sm:$0xff] %vm47_vm4, %v46_v13 }
  0x4c   :  { %59 = dma.vmem_to_hbm [thread:$0]  %s55_s1, 128, %s57_s18, [#allocation5]  }
  0x4d   :  { %122 = dma.done.wait [#allocation5], 128  }
  0x4e   :  { %123 = vsyncadd [#allocation5], 4294967168 }
  0x4f   :  { %64 = vsyncpa [#allocation4], 1 }
  0x50   :  { %65 = vsyncpa [#allocation5], 1 }

</bundles_post_ra>
